<compile_context>
chip_gen: v7x
topology: tpu7x:2x2x1
jax: 0.10.0
libtpu: 0.0.40
codegen_flags: <defaults>
</compile_context>

<pallas_src>
import functools

import jax
import jax.numpy as jnp
from jax.experimental import pallas as pl
from jax.experimental.pallas import tpu as pltpu

FEAT_DIM = 1000  # nn.Linear(1000, out_features): backbone emits 1000 features


def _round_up(x, m):
    return (x + m - 1) // m * m


def _skin_forward_kernel(x_ref, g_ref, w1t_ref, b1_ref, w2_ref, b2_ref,
                         out_ref, acc_ref, *, thw, hw_len, n_rows, block_rows,
                         mask_hw, inv_hw):
    """Grid = (batch tiles, HW tiles); HW is the trailing reduction axis.

    x_ref   : [RB, thw]        streamed spatial tile of the flattened
                               [B*C, H*W] activation (native dtype)
    g_ref   : [tb, RB]         0/1 group-sum matrix (sums the C channel rows
                               of each batch item) -> reshape-free finalize
    w1t_ref : [RB, FEAT_PAD]   backbone-stand-in Linear weight, tiled per row
    b1_ref  : [1, FEAT_PAD]
    w2_ref  : [FEAT_PAD, OUT_PAD]   self.output weight (transposed, padded)
    b2_ref  : [1, OUT_PAD]
    out_ref : [tb, OUT_PAD]
    acc_ref : [RB, 128] f32    lane-dense spatial-sum accumulator
    """
    b = pl.program_id(0)
    hw = pl.program_id(1)

    @pl.when(hw == 0)
    def _init():
        acc_ref[...] = jnp.zeros_like(acc_ref)

    # Lane-dense accumulation: add the thw/128 lane chunks of this tile with
    # plain VPU adds; the single cross-lane reduce is deferred to finalize.
    if mask_hw:
        col = jax.lax.broadcasted_iota(jnp.int32, (block_rows, 128), 1)
    partial = acc_ref[...]
    for j in range(thw // 128):
        chunk = x_ref[:, j * 128:(j + 1) * 128].astype(jnp.float32)
        if mask_hw:
            valid = (hw * thw + j * 128 + col) < hw_len
            chunk = jnp.where(valid, chunk, 0.0)
        partial = partial + chunk
    acc_ref[...] = partial

    @pl.when(hw == pl.num_programs(1) - 1)
    def _finalize():
        # Global average pool: one cross-lane reduce per batch tile, divided
        # by the TRUE H*W (padding/mask contributes zeros only).
        rowsum = jnp.sum(acc_ref[...], axis=1, keepdims=True) * inv_hw  # [RB,1]
        # Zero rows belonging to a ragged batch tail so out-of-bounds garbage
        # (possibly NaN/Inf) cannot leak into valid rows via the matmul.
        row = jax.lax.broadcasted_iota(jnp.int32, rowsum.shape, 0)
        rowsum = jnp.where(b * block_rows + row < n_rows, rowsum, 0.0)
        # Backbone tail stand-in: Linear(C -> 1000) + ReLU, expressed as
        # G @ (rowsum * W1_tiled) so no in-kernel reshape is needed.
        m = rowsum * w1t_ref[...]                                     # [RB, FEAT]
        h = jnp.dot(g_ref[...], m, preferred_element_type=jnp.float32)
        h = jnp.maximum(h + b1_ref[...], 0.0)                         # [tb, FEAT]
        # Classifier head: self.output = nn.Linear(1000, out_features).
        logits = jnp.dot(h, w2_ref[...], preferred_element_type=jnp.float32)
        out_ref[...] = (logits + b2_ref[...]).astype(out_ref.dtype)


def skin_distinction_forward(x_nchw, w1, b1, w2, b2, *, tb=None, thw=None):
    """x_nchw: [B, C, H, W] (any float dtype, streamed natively).
    w1: [C, 1000], b1: [1000], w2: [1000, OUT], b2: [OUT].
    Returns float32 logits [B, out_features]."""
    B, C, H, W = x_nchw.shape
    HW = H * W
    N = B * C
    feat_dim = w1.shape[1]
    out_features = w2.shape[1]

    # ---- lane-pad feature / output dims to multiples of 128 (zero pad) ----
    FEAT_PAD = _round_up(feat_dim, 128)       # 1000 -> 1024
    OUT_PAD = _round_up(out_features, 128)    # 7    -> 128

    w1p = jnp.zeros((C, FEAT_PAD), jnp.float32).at[:, :feat_dim].set(
        w1.astype(jnp.float32))
    b1p = jnp.zeros((1, FEAT_PAD), jnp.float32).at[:, :feat_dim].set(
        b1.reshape(1, -1).astype(jnp.float32))
    w2p = jnp.zeros((FEAT_PAD, OUT_PAD), jnp.float32).at[
        :feat_dim, :out_features].set(w2.astype(jnp.float32))
    b2p = jnp.zeros((1, OUT_PAD), jnp.float32).at[:, :out_features].set(
        b2.reshape(1, -1).astype(jnp.float32))

    # ---- batch tiling: flatten (B, C) onto the sublane axis (no x copy) ----
    if tb is None:
        if B >= 16:
            # >=2 batch tiles so both v7x TensorCores get grid work; tb must
            # be a multiple of 8 (output-block sublane rule).
            tb = min(64, max(8, (B // 2) // 8 * 8))
            t = tb
            while t > 8 and B % t != 0:       # prefer a divisor of B
                t -= 8
            if B % t == 0:
                tb = t
        else:
            tb = B          # single batch tile; row block == full array dim
    assert tb == B or tb % 8 == 0, "tb must be a multiple of 8 (or equal B)"
    RB = tb * C             # rows per streamed x block
    grid_b = pl.cdiv(B, tb)
    B_out = grid_b * tb     # padded output rows (tiny), sliced off at the end

    # ---- spatial (lane) tiling ----
    dt_bytes = jnp.dtype(x_nchw.dtype).itemsize
    rb8 = _round_up(RB, 8)
    tb8 = _round_up(tb, 8)

    # VMEM budget per chip generation (v5e/v6e: 128 MiB, v7x: 64 MiB per TC).
    vmem_cap = 64 * 1024 * 1024
    try:
        vmem_cap = int(getattr(pltpu.get_tpu_info(),
                               "vmem_capacity_bytes", vmem_cap))
    except Exception:
        pass
    budget = min(100 * 2**20, int(vmem_cap * 0.72))  # ~46 MiB v7x, ~92 MiB v6e

    # VMEM-resident weights / output block / scratch, with sublane padding and
    # default double-buffering accounted for (small: a few MiB at most).
    fixed = (2 * (rb8 * FEAT_PAD                    # w1_tiled
                  + tb8 * _round_up(RB, 128)        # G
                  + 8 * FEAT_PAD                    # b1
                  + FEAT_PAD * OUT_PAD              # w2
                  + 8 * OUT_PAD                     # b2
                  + tb8 * OUT_PAD)                  # out block
             + rb8 * 128) * 4                       # acc scratch (f32)

    if thw is None:
        # Target >= 8 MiB (cap 16 MiB) per streamed x buffer to amortize the
        # ~0.35 us per-grid-step overhead and keep the DMA engine saturated.
        x_buf_target = max(128 * rb8 * dt_bytes,
                           min(16 * 2**20, (budget - fixed - 2 * 2**20) // 2))
        thw = max(128, (x_buf_target // (rb8 * dt_bytes)) // 128 * 128)
        thw = min(thw, _round_up(HW, 128))
    assert thw % 128 == 0, "HW tile must be a multiple of 128 lanes"

    grid_hw = pl.cdiv(HW, thw)
    mask_hw = (HW % thw) != 0   # ragged spatial tail handled in-kernel

    # Free, contiguous reshape: no padded copy, no dtype cast in the wrapper.
    x2d = x_nchw.reshape(N, HW)

    # Group-sum matrix and row-tiled backbone weight (reshape-free finalize).
    g_mat = jnp.repeat(jnp.eye(tb, dtype=jnp.float32), C, axis=1)   # [tb, RB]
    w1t = jnp.tile(w1p, (tb, 1))                                    # [RB, FEAT_PAD]

    x_block_bytes = rb8 * thw * dt_bytes
    needed = 2 * x_block_bytes + fixed
    vmem_limit = int(max(32 * 2**20, needed + 8 * 2**20))

    bytes_accessed = (N * HW * dt_bytes
                      + (w1t.size + g_mat.size + b1p.size + w2p.size
                         + b2p.size + B_out * OUT_PAD) * 4)
    flops = (N * HW                              # spatial sum
             + 2 * B_out * RB * FEAT_PAD         # group-sum / Linear C->1000
             + 2 * B_out * FEAT_PAD * OUT_PAD)   # Linear 1000 -> out

    kernel = functools.partial(
        _skin_forward_kernel, thw=thw, hw_len=HW, n_rows=N, block_rows=RB,
        mask_hw=mask_hw, inv_hw=1.0 / float(HW))

    out_pad = pl.pallas_call(
        kernel,
        out_shape=jax.ShapeDtypeStruct((B_out, OUT_PAD), jnp.float32),
        grid_spec=pltpu.PrefetchScalarGridSpec(
            num_scalar_prefetch=0,
            grid=(grid_b, grid_hw),
            in_specs=[
                # streamed activation tiles (native dtype)
                pl.BlockSpec((RB, thw), lambda b, hw: (b, hw)),
                # weights/biases: constant index maps -> VMEM-resident
                pl.BlockSpec((tb, RB), lambda b, hw: (0, 0)),
                pl.BlockSpec((RB, FEAT_PAD), lambda b, hw: (0, 0)),
                pl.BlockSpec((1, FEAT_PAD), lambda b, hw: (0, 0)),
                pl.BlockSpec((FEAT_PAD, OUT_PAD), lambda b, hw: (0, 0)),
                pl.BlockSpec((1, OUT_PAD), lambda b, hw: (0, 0)),
            ],
            out_specs=pl.BlockSpec((tb, OUT_PAD), lambda b, hw: (b, 0)),
            scratch_shapes=[pltpu.VMEM((RB, 128), jnp.float32)],
        ),
        compiler_params=pltpu.CompilerParams(
            dimension_semantics=("parallel", "arbitrary"),
            vmem_limit_bytes=vmem_limit,
        ),
        cost_estimate=pl.CostEstimate(
            flops=flops, transcendentals=0, bytes_accessed=bytes_accessed),
    )(x2d, g_mat, w1t, b1p, w2p, b2p)

    # slice padded batch rows / padded output lanes back off
    return out_pad[:B, :out_features]


def init_params(key, in_channels, out_features):
    """Deterministic parameter init (PyTorch Linear-style uniform)."""
    k1, k2, k3, k4 = jax.random.split(key, 4)
    lim1 = 1.0 / jnp.sqrt(in_channels)
    lim2 = 1.0 / jnp.sqrt(FEAT_DIM)
    w1 = jax.random.uniform(k1, (in_channels, FEAT_DIM), jnp.float32, -lim1, lim1)
    b1 = jax.random.uniform(k2, (FEAT_DIM,), jnp.float32, -lim1, lim1)
    w2 = jax.random.uniform(k3, (FEAT_DIM, out_features), jnp.float32, -lim2, lim2)
    b2 = jax.random.uniform(k4, (FEAT_DIM if False else out_features,),
                            jnp.float32, -lim2, lim2)
    return w1, b1, w2, b2


def _reference(x, w1, b1, w2, b2):
    feat = jnp.mean(x.reshape(x.shape[0], x.shape[1], -1), axis=-1)
    h = jnp.maximum(feat @ w1 + b1, 0.0)
    return h @ w2 + b2


if __name__ == "__main__":
    key = jax.random.PRNGKey(0)
    kx, kp, kx2 = jax.random.split(key, 3)

    out_features = 7                  # e.g. 7 skin-disease classes

    # ---- case 1: multi-step HW reduction (thw=128 -> 2 spatial grid steps) ----
    B, C, H, W = 2, 4, 16, 16
    x = jax.random.normal(kx, (B, C, H, W), jnp.float32)
    w1, b1, w2, b2 = init_params(kp, C, out_features)

    logits = skin_distinction_forward(x, w1, b1, w2, b2, thw=128)
    jax.block_until_ready(logits)
    ref = _reference(x, w1, b1, w2, b2)
    assert logits.shape == (B, out_features)
    assert jnp.allclose(logits, ref, atol=2e-4, rtol=2e-4)

    # ---- case 2: auto tiling (single full-width spatial block) ----
    logits2 = skin_distinction_forward(x, w1, b1, w2, b2)
    jax.block_until_ready(logits2)
    assert jnp.allclose(logits2, ref, atol=2e-4, rtol=2e-4)

    # ---- case 3: ragged H*W tail (13*13 = 169) masked inside the kernel ----
    B3, C3, H3, W3 = 2, 3, 13, 13
    x3 = jax.random.normal(kx2, (B3, C3, H3, W3), jnp.float32)
    w13, b13, w23, b23 = init_params(kp, C3, out_features)
    logits3 = skin_distinction_forward(x3, w13, b13, w23, b23, thw=128)
    jax.block_until_ready(logits3)
    ref3 = _reference(x3, w13, b13, w23, b23)
    assert jnp.allclose(logits3, ref3, atol=2e-4, rtol=2e-4)

    print("KERNEL_OK")
</pallas_src>

<mosaic_0001>
module attributes {stable_mosaic.version = 11 : i64} {
  func.func @_skin_forward_kernel(%arg0: i32, %arg1: i32, %arg2: memref<8x128xf32, #tpu.memory_space<vmem>>, %arg3: memref<2x8xf32, #tpu.memory_space<vmem>>, %arg4: memref<8x1024xf32, #tpu.memory_space<vmem>>, %arg5: memref<1x1024xf32, #tpu.memory_space<vmem>>, %arg6: memref<1024x128xf32, #tpu.memory_space<vmem>>, %arg7: memref<1x128xf32, #tpu.memory_space<vmem>>, %arg8: memref<2x128xf32, #tpu.memory_space<vmem>>, %arg9: memref<8x128xf32, #tpu.memory_space<vmem>>) attributes {dimension_semantics = [#tpu.dimension_semantics<parallel>, #tpu.dimension_semantics<arbitrary>], iteration_bounds = array<i64: 1, 2>, scalar_prefetch = 0 : i64, scratch_operands = 1 : i64, tpu.core_type = #tpu.core_type<tc>, window_params = [{transform_indices = @transform_0, window_bounds = array<i64: 8, 128>}, {pipeline_mode = #tpu.pipeline_mode<synchronous>, transform_indices = @transform_1, window_bounds = array<i64: 2, 8>}, {pipeline_mode = #tpu.pipeline_mode<synchronous>, transform_indices = @transform_2, window_bounds = array<i64: 8, 1024>}, {pipeline_mode = #tpu.pipeline_mode<synchronous>, transform_indices = @transform_3, window_bounds = array<i64: 1, 1024>}, {pipeline_mode = #tpu.pipeline_mode<synchronous>, transform_indices = @transform_4, window_bounds = array<i64: 1024, 128>}, {pipeline_mode = #tpu.pipeline_mode<synchronous>, transform_indices = @transform_5, window_bounds = array<i64: 1, 128>}, {transform_indices = @transform_6, window_bounds = array<i64: 2, 128>}]} {
    %c0_i32 = arith.constant 0 : i32
    %0 = arith.cmpi eq, %arg1, %c0_i32 : i32
    %1 = arith.extui %0 : i1 to i32
    %c0_i32_0 = arith.constant 0 : i32
    %2 = arith.cmpi ne, %1, %c0_i32_0 : i32
    scf.if %2 {
      %cst = arith.constant 0.000000e+00 : f32
      %10 = vector.broadcast %cst : f32 to vector<8x128xf32>
      %c0_7 = arith.constant 0 : index
      %c0_8 = arith.constant 0 : index
      %11 = vector.load %arg9[%c0_7, %c0_8] : memref<8x128xf32, #tpu.memory_space<vmem>>, vector<8x128xf32>
      tpu.vector_store %arg9[%c0_7, %c0_8], %10 {strides = array<i32>} : memref<8x128xf32, #tpu.memory_space<vmem>>, vector<8x128xf32>,
    } else {
    }
    %c0 = arith.constant 0 : index
    %c0_1 = arith.constant 0 : index
    %3 = vector.load %arg9[%c0, %c0_1] : memref<8x128xf32, #tpu.memory_space<vmem>>, vector<8x128xf32>
    %c0_2 = arith.constant 0 : index
    %c0_3 = arith.constant 0 : index
    %4 = vector.load %arg2[%c0_2, %c0_3] : memref<8x128xf32, #tpu.memory_space<vmem>>, vector<8x128xf32>
    %5 = arith.addf %3, %4 : vector<8x128xf32>
    %c0_4 = arith.constant 0 : index
    %c0_5 = arith.constant 0 : index
    %6 = vector.load %arg9[%c0_4, %c0_5] : memref<8x128xf32, #tpu.memory_space<vmem>>, vector<8x128xf32>
    tpu.vector_store %arg9[%c0_4, %c0_5], %5 {strides = array<i32>} : memref<8x128xf32, #tpu.memory_space<vmem>>, vector<8x128xf32>,
    %c1_i32 = arith.constant 1 : i32
    %7 = arith.cmpi eq, %arg1, %c1_i32 : i32
    %8 = arith.extui %7 : i1 to i32
    %c0_i32_6 = arith.constant 0 : i32
    %9 = arith.cmpi ne, %8, %c0_i32_6 : i32
    scf.if %9 {
      %c0_7 = arith.constant 0 : index
      %c0_8 = arith.constant 0 : index
      %10 = vector.load %arg9[%c0_7, %c0_8] : memref<8x128xf32, #tpu.memory_space<vmem>>, vector<8x128xf32>
      %cst = arith.constant dense<0.000000e+00> : vector<8xf32>
      %11 = vector.multi_reduction <add>, %10, %cst [1] : vector<8x128xf32> to vector<8xf32>
      %12 = vector.shape_cast %11 : vector<8xf32> to vector<8x1xf32>
      %cst_9 = arith.constant 3.906250e-03 : f32
      %13 = vector.broadcast %cst_9 : f32 to vector<8x1xf32>
      %14 = arith.mulf %12, %13 : vector<8x1xf32>
      %15 = tpu.iota {dimensions = array<i32: 0>} : vector<8x1xi32>
      %c8_i32 = arith.constant 8 : i32
      %16 = arith.muli %arg0, %c8_i32 : i32
      %17 = vector.broadcast %16 : i32 to vector<8x1xi32>
      %18 = arith.addi %17, %15 : vector<8x1xi32>
      %c8_i32_10 = arith.constant 8 : i32
      %19 = vector.broadcast %c8_i32_10 : i32 to vector<8x1xi32>
      %20 = arith.cmpi slt, %18, %19 : vector<8x1xi32>
      %cst_11 = arith.constant 0.000000e+00 : f32
      %21 = vector.broadcast %cst_11 : f32 to vector<8x1xf32>
      %22 = arith.select %20, %14, %21 : vector<8x1xi1>, vector<8x1xf32>
      %c0_12 = arith.constant 0 : index
      %c0_13 = arith.constant 0 : index
      %23 = vector.load %arg4[%c0_12, %c0_13] : memref<8x1024xf32, #tpu.memory_space<vmem>>, vector<8x1024xf32>
      %24 = vector.broadcast %22 : vector<8x1xf32> to vector<8x1024xf32>
      %25 = arith.mulf %24, %23 : vector<8x1024xf32>
      %c0_14 = arith.constant 0 : index
      %c0_15 = arith.constant 0 : index
      %26 = vector.load %arg3[%c0_14, %c0_15] : memref<2x8xf32, #tpu.memory_space<vmem>>, vector<2x8xf32>
      %cst_16 = arith.constant dense<0.000000e+00> : vector<2x1024xf32>
      %27 = tpu.matmul %26, %25, %cst_16 {dimension_numbers = #tpu.dot_dimension_numbers<[1], [0], [0], [1], [0, 0, 1, 1], [], []>} : vector<2x8xf32>, vector<8x1024xf32>, vector<2x1024xf32> -> vector<2x1024xf32>
      %c0_17 = arith.constant 0 : index
      %c0_18 = arith.constant 0 : index
      %28 = vector.load %arg5[%c0_17, %c0_18] : memref<1x1024xf32, #tpu.memory_space<vmem>>, vector<1x1024xf32>
      %29 = vector.broadcast %28 : vector<1x1024xf32> to vector<2x1024xf32>
      %30 = arith.addf %27, %29 : vector<2x1024xf32>
      %cst_19 = arith.constant 0.000000e+00 : f32
      %31 = vector.broadcast %cst_19 : f32 to vector<2x1024xf32>
      %32 = arith.maximumf %30, %31 : vector<2x1024xf32>
      %c0_20 = arith.constant 0 : index
      %c0_21 = arith.constant 0 : index
      %33 = vector.load %arg6[%c0_20, %c0_21] : memref<1024x128xf32, #tpu.memory_space<vmem>>, vector<1024x128xf32>
      %cst_22 = arith.constant dense<0.000000e+00> : vector<2x128xf32>
      %34 = tpu.matmul %32, %33, %cst_22 {dimension_numbers = #tpu.dot_dimension_numbers<[1], [0], [0], [1], [0, 0, 1, 1], [], []>} : vector<2x1024xf32>, vector<1024x128xf32>, vector<2x128xf32> -> vector<2x128xf32>
      %c0_23 = arith.constant 0 : index
      %c0_24 = arith.constant 0 : index
      %35 = vector.load %arg7[%c0_23, %c0_24] : memref<1x128xf32, #tpu.memory_space<vmem>>, vector<1x128xf32>
      %36 = vector.broadcast %35 : vector<1x128xf32> to vector<2x128xf32>
      %37 = arith.addf %34, %36 : vector<2x128xf32>
      %c0_25 = arith.constant 0 : index
      %c0_26 = arith.constant 0 : index
      %38 = vector.load %arg8[%c0_25, %c0_26] : memref<2x128xf32, #tpu.memory_space<vmem>>, vector<2x128xf32>
      tpu.vector_store %arg8[%c0_25, %c0_26], %37 {strides = array<i32>} : memref<2x128xf32, #tpu.memory_space<vmem>>, vector<2x128xf32>,
    } else {
    }
    return
  }
  func.func @transform_0(%arg0: i32, %arg1: i32) -> (i32, i32) {
    %c0_i32 = arith.constant 0 : i32
    return %arg0, %arg1 : i32, i32
  }
  func.func @transform_1(%arg0: i32, %arg1: i32) -> (i32, i32) {
    %c0_i32 = arith.constant 0 : i32
    %c0_i32_0 = arith.constant 0 : i32
    %c0_i32_1 = arith.constant 0 : i32
    return %c0_i32, %c0_i32_0 : i32, i32
  }
  func.func @transform_2(%arg0: i32, %arg1: i32) -> (i32, i32) {
    %c0_i32 = arith.constant 0 : i32
    %c0_i32_0 = arith.constant 0 : i32
    %c0_i32_1 = arith.constant 0 : i32
    return %c0_i32, %c0_i32_0 : i32, i32
  }
  func.func @transform_3(%arg0: i32, %arg1: i32) -> (i32, i32) {
    %c0_i32 = arith.constant 0 : i32
    %c0_i32_0 = arith.constant 0 : i32
    %c0_i32_1 = arith.constant 0 : i32
    return %c0_i32, %c0_i32_0 : i32, i32
  }
  func.func @transform_4(%arg0: i32, %arg1: i32) -> (i32, i32) {
    %c0_i32 = arith.constant 0 : i32
    %c0_i32_0 = arith.constant 0 : i32
    %c0_i32_1 = arith.constant 0 : i32
    return %c0_i32, %c0_i32_0 : i32, i32
  }
  func.func @transform_5(%arg0: i32, %arg1: i32) -> (i32, i32) {
    %c0_i32 = arith.constant 0 : i32
    %c0_i32_0 = arith.constant 0 : i32
    %c0_i32_1 = arith.constant 0 : i32
    return %c0_i32, %c0_i32_0 : i32, i32
  }
  func.func @transform_6(%arg0: i32, %arg1: i32) -> (i32, i32) {
    %c0_i32 = arith.constant 0 : i32
    %c0_i32_0 = arith.constant 0 : i32
    return %arg0, %c0_i32 : i32, i32
  }
}

</mosaic_0001>

<bundles_post_ra>
// kernel: tpu_custom_call.1
= control target key start
LH: loop header
LB: loop body
LE: loop exit
PB: predicated region body
PF: predicated region fallthrough
CT: control target
= control target key end

     0   :  { %11 = vsyncpa [#allocation4], 0  ;;  %s2037_s0 = inlined_call_operand.hbm [shape: f32[8,256], index: 0, kind: input, shape index: {}]   ;;  %s2038_s1 = inlined_call_operand.vmem [shape: f32[2,8], index: 1, kind: input, shape index: {}]   ;;  %s2039_s2 = inlined_call_operand.hbm [shape: f32[8,1024], index: 2, kind: input, shape index: {}]   ;;  %s2040_s3 = inlined_call_operand.vmem [shape: f32[1,1024], index: 3, kind: input, shape index: {}]   ;;  %s2041_s4 = inlined_call_operand.hbm [shape: f32[1024,128], index: 4, kind: input, shape index: {}]   ;;  %s2042_s5 = inlined_call_operand.vmem [shape: f32[1,128], index: 5, kind: input, shape index: {}]   ;;  %s2043_s6 = inlined_call_operand.hbm [shape: f32[2,128], index: 6, kind: output, shape index: {}]  }
   0x1   :  { %13 = vsyncpa [#allocation4 + $0x1], 0 }
   0x2   :  { %14 = vsyncpa [#allocation7], 0 }
   0x3   :  { %15 = vsyncpa [#allocation5], 0  ;;  %s1781_s21 = smov 0   ;;  %s1783_s22 = smov 0  }
   0x4   :  { %s1785_s23 = smov 0   ;;  %s1787_s24 = smov 0  }
   0x5   :  { %s1789_s25 = smov 0   ;;  %s1791_s26 = smov 0  }
   0x6 LB: > { %s1189_s27 = sadd.s32 4294967295, %s1736_s26   ;;  %p55_p0 = scmp.ne.s32.totalorder %s1720_s22, %s1716_s21  ;;  %s1736_s26 = sphi %s1791_s26, %s21_s26   ;;  %s1732_s25 = sphi %s1789_s25, %s2062_s25   ;;  %s1728_s24 = sphi %s1787_s24, %s2061_s24   ;;  %s1724_s23 = sphi %s1785_s23, %s2060_s23   ;;  %s1720_s22 = sphi %s1783_s22, %s2059_s22   ;;  %s1716_s21 = sphi %s1781_s21, %s2058_s21  }
   0x7   : > { %p1813_p1 = scmp.eq.s32.totalorder %s1189_s27, 0  ;;  %p1190_p2 = scmp.ge.s32.totalorder %s1736_s26, 1 }
   0x8   : > { %p197_p3 = scmp.lt.s32.totalorder %s1736_s26, 3  ;;  %s1738_s7 = smov [#allocation6]  }
   0x9   : > { %s2048_s28 = scalar_select %p1813_p1, 1, 0 }
   0xa   : > { %p1821_p4 = por %p1813_p1, %p55_p0  ;;  %p1825_p5 = pnand %p1190_p2, %p197_p3 }
   0xb   : > { %s213_s8 = sshll.u32 %s1738_s7, 4  ;;  %s1739_s9 = smov [#allocation8]   ;;  %s214_s8 = int_to_ptr.vmem [resolvable:$true] %s213_s8 }
   0xc   : > { %s2049_s29 = scalar_select %p1821_p4, 1, 0 }
   0xd   : > { %s2050_s30 = scalar_select %p1825_p5, 1, 0 }
   0xe   : > { %p1493_p6 = pneg %p1825_p5  ;;  %s226_s10 = sshll.u32 %s1739_s9, 4  ;;  %s1837_s10 = int_to_ptr.vmem [resolvable:$true] %s226_s10 }
   0xf   : > { %s1566_s14 = scalar_lea.hbm %s2039_s2, 1024 }
  0x10   : > { %p1833_p7 = pnand %p1493_p6, %p1813_p1  ;;  %p1567_p8 = scmp.ne.s32.totalorder %s2039_s2, %s1566_s14 }
  0x11   : > { %p1573_p12 = scmp.lt.u32.totalorder %s1566_s14, %s2039_s2 }
  0x12   : > { %p1568_p9 = pneg %p1833_p7 }
  0x14   : > { %p1569_p10 = pnand %p1568_p9, %p1567_p8 }
  0x16   : > { %p1570_p11 = pneg %p1569_p10 }
  0x18   : > { %p1575_p13 = pnand %p1573_p12, %p1570_p11 }
  0x1a   : > { %1578 = shalt.err (!%p1575_p13)
}
  0x1b   : > { %s1579_s19 = scalar_lea.vmem %s214_s8, 1024  ;;  %p1587_p6 = scmp.lt.s32.totalorder %s214_s8, %s214_s8 }
  0x1c   : > { %p1580_p0 = scmp.ne.s32.totalorder %s214_s8, %s1579_s19  ;;  %p1588_p1 = scmp.lt.s32.totalorder %s1579_s19, %s1579_s19 }
  0x1e   : > { %p1582_p2 = pnand %p1580_p0, %p1568_p9  ;;  %p1589_p4 = por %p1588_p1, %p1587_p6 }
  0x20   : > { %p1583_p3 = pneg %p1582_p2 }
  0x22   : > { %p1590_p5 = pnand %p1589_p4, %p1583_p3 }
  0x24   : > { %1593 = shalt.err (!%p1590_p5)
}
  0x25   : > { %1496 = dma.hbm_to_vmem [thread:$0]  (!%p1833_p7), %s2039_s2, 1024, %s214_s8, [#allocation7]  }
  0x26   : > { %s1594_s12 = scalar_lea.hbm %s2041_s4, 16384 }
  0x27   : > { %p1595_p8 = scmp.ne.s32.totalorder %s2041_s4, %s1594_s12  ;;  %p1601_p5 = scmp.lt.u32.totalorder %s1594_s12, %s2041_s4 }
  0x29   : > { %p1597_p1 = pnand %p1595_p8, %p1568_p9 }
  0x2b   : > { %p1598_p4 = pneg %p1597_p1 }
  0x2d   : > { %p1603_p10 = pnand %p1601_p5, %p1598_p4 }
  0x2f   : > { %1606 = shalt.err (!%p1603_p10)
}
  0x30   : > { %s1607_s8 = scalar_lea.vmem %s1837_s10, 16384  ;;  %p1615_p0 = scmp.lt.s32.totalorder %s1837_s10, %s1837_s10 }
  0x31   : > { %p1608_p11 = scmp.ne.s32.totalorder %s1837_s10, %s1607_s8  ;;  %p1616_p2 = scmp.lt.s32.totalorder %s1607_s8, %s1607_s8 }
  0x33   : > { %p1610_p12 = pnand %p1608_p11, %p1568_p9  ;;  %p1617_p3 = por %p1616_p2, %p1615_p0 }
  0x35   : > { %p1611_p13 = pneg %p1610_p12 }
  0x37   : > { %p1618_p6 = pnand %p1617_p3, %p1611_p13 }
  0x39   : > { %1621 = shalt.err (!%p1618_p6)
}
  0x3a   : > { %s1740_s17 = smov 128   ;;  %s1741_s18 = smov 8  }
  0x3b   : > { %1499 = dma.hbm_to_vmem [thread:$0]  (!%p1833_p7), %s2041_s4, 16384, %s1837_s10, [#allocation7], %s1740_s17, %s1740_s17, %s1741_s18  }
  0x3c   : > { %s30_s21 = sadd.s32 1, %s1732_s25  ;;  %s42_s7 = sadd.s32 1, %s1724_s23 }
  0x3d   : > { %p31_p9 = scmp.ge.s32.totalorder %s30_s21, 2  ;;  %p49_p8 = scmp.ne.s32.totalorder %s1724_s23, %s1720_s22 }
  0x3e   : > { %p50_p1 = scmp.eq.s32.totalorder %s1736_s26, 0  ;;  %p1506_p4 = scmp.lt.s32.totalorder %s1736_s26, 2 }
  0x3f   : > { %s2064_s21 = smov (%p31_p9, %s30_s21), 0  ;;  %s243_s9 = sand.u32 1, %s1724_s23  }
  0x40   : > { %p51_p5 = por %p50_p1, %p49_p8  ;;  %s38_s12 = ssub.s32 %s1732_s25, %s2064_s21 }
  0x41   : > { %p40_p10 = scmp.eq.s32.totalorder %s38_s12, 0  ;;  %s1194_s13 = sshll.u32 %s243_s9, 3 }
  0x42   : > { %s1195_s11 = sshll.u32 %s1732_s25, 7  ;;  %s247_s8 = scalar_lea.vmem [#allocation3], %s1194_s13 }
  0x43   : > { %s1899_s14 = scalar_select %p40_p10, %s1724_s23, %s42_s7  }
  0x44   : > { %s1904_s16 = scalar_lea.hbm %s2037_s0, %s1195_s11  ;;  %s256_s17 = sshll.u32 %s247_s8, 4  ;;  %s1906_s17 = int_to_ptr.vmem [resolvable:$true] %s256_s17 }
  0x45   : > { %p1910_p7 = pnand %p1506_p4, %p51_p5  ;;  %s244_s19 = scalar_lea.sflag [#allocation4], %s243_s9 }
  0x46   : > { %s1622_s20 = scalar_lea.hbm %s1904_s16, 128  ;;  %s1627_s13 = scalar_lea.hbm %s2037_s0, 256 }
  0x47   : > { %p1623_p11 = scmp.ne.s32.totalorder %s1904_s16, %s1622_s20  ;;  %p1624_p12 = pneg %p1910_p7 }
  0x48   : > { %p1628_p2 = scmp.lt.u32.totalorder %s1904_s16, %s2037_s0  ;;  %p1629_p3 = scmp.lt.u32.totalorder %s1627_s13, %s1622_s20 }
  0x49   : > { %p1625_p13 = pnand %p1624_p12, %p1623_p11  ;;  %p1631_p9 = scmp.lt.u32.totalorder %s1622_s20, %s1904_s16 }
  0x4a   : > { %p1630_p6 = por %p1629_p3, %p1628_p2 }
  0x4b   : > { %p1626_p0 = pneg %p1625_p13 }
  0x4c   : > { %p1632_p8 = por %p1631_p9, %p1630_p6 }
  0x4e   : > { %p1633_p1 = pnand %p1632_p8, %p1626_p0 }
  0x50   : > { %1636 = shalt.err (!%p1633_p1)
}
  0x51   : > { %s1637_s9 = scalar_lea.vmem %s1906_s17, 128  ;;  %s1742_s10 = smov [#allocation3]  }
  0x52   : > { %p1638_p4 = scmp.ne.s32.totalorder %s1906_s17, %s1637_s9  ;;  %s1642_s8 = sshll.u32 %s1742_s10, 4  ;;  %s1643_s8 = int_to_ptr.vmem [resolvable:$false] %s1642_s8 }
  0x53   : > { %s1644_s7 = scalar_lea.vmem %s1643_s8, 256  ;;  %p1645_p11 = scmp.lt.s32.totalorder %s1906_s17, %s1643_s8 }
  0x54   : > { %p1640_p5 = pnand %p1638_p4, %p1624_p12  ;;  %p1646_p13 = scmp.lt.s32.totalorder %s1644_s7, %s1637_s9 }
  0x56   : > { %p1641_p10 = pneg %p1640_p5  ;;  %p1647_p2 = por %p1646_p13, %p1645_p11 }
  0x58   : > { %p1648_p3 = pnand %p1647_p2, %p1641_p10 }
  0x5a   : > { %1651 = shalt.err (!%p1648_p3)
}
  0x5b   : > { %1503 = dma.hbm_to_vmem [thread:$0]  (!%p1910_p7), %s1904_s16, 128, %s1906_s17, %s244_s19  }
  0x5c   : > { %p2053_p0 = scmp.ne.s32.totalorder %s2050_s30, 0 }
  0x5d   : > { %s267_s20 = sand.u32 (!%p2053_p0), 1, %s1720_s22   ;;  %p2054_p12 = scmp.ne.s32.totalorder (!%p2053_p0), %s2049_s29, 0 }
  0x5e   : > { %265 = sbr.rel (%p2053_p0) target bundleno = 768 (0x300), region = 44  ;;  %s1197_s12 = sshll.u32 (!%p2053_p0), %s267_s20, 3 }
  0x5f   : > { %s268_s13 = scalar_lea.sflag (!%p2053_p0), [#allocation4], %s267_s20  ;;  %s271_s11 = scalar_lea.vmem (!%p2053_p0), [#allocation3], %s1197_s12 }
  0x65   : > { %1703 = dma.done.wait (%p2054_p12), %s268_s13, 128  }
  0x66   : > { %1705 = vsyncadd (%p2054_p12), %s268_s13, 4294967168  ;;  %p2055_p6 = scmp.ne.s32.totalorder %s2048_s28, 0 }
  0x68   : > { %1707 = dma.done.wait (%p2055_p6), [#allocation7], 17408  }
  0x69   : > { %1709 = vsyncadd (%p2055_p6), [#allocation7], 4294949888  ;;  %p1200_p7 = scmp.ne.s32.totalorder %s1728_s24, 0 }
  0x6a   : > { %v1743_v0 = vmov (!%p1200_p7), 0.0  }
  0x6b   : > { %306 = sbr.rel (%p1200_p7) target bundleno = 114 (0x72), region = 60  ;;  %307 = vst [vmem:[#allocation2] sm:$0xff] (!%p1200_p7), %v1743_v0 }
  0x72 PF: > { %v308_v1 = vld [vmem:[#allocation2] sm:$0xff]  ;;  %v309_v2 = vld [vmem:[%s271_s11] sm:$0xff]  ;;  %p1201_p9 = scmp.ne.s32.totalorder %s1728_s24, 1 }
  0x73   : > { %v310_v3 = vadd.f32 %v309_v2, %v308_v1  ;;  %v1744_v5 = vmov (!%p1201_p9), 0.0   ;;  %v328_v6 = vld [vmem:[#allocation6 + $0x8] sm:$0xff] (!%p1201_p9)  ;;  %v330_v8 = vld [vmem:[#allocation6 + $0x18] sm:$0xff] (!%p1201_p9)  ;;  %v327_v9 = vld [vmem:[#allocation6] sm:$0xff] (!%p1201_p9)  ;;  %vm386_vm0 = vcmask (!%p1201_p9), 64512  }
  0x74   : > { %315 = sbr.rel (%p1201_p9) target bundleno = 743 (0x2e7), region = 64  ;;  %454 = vmatprep.mubr.f32.mxu0 (!%p1201_p9), %v1744_v5  ;;  %525 = vmatprep.mubr.f32.mxu1 (!%p1201_p9), %v1744_v5  ;;  %v329_v10 = vld [vmem:[#allocation6 + $0x10] sm:$0xff] (!%p1201_p9)  ;;  %v332_v12 = vld [vmem:[#allocation6 + $0x28] sm:$0xff] (!%p1201_p9)  ;;  %v334_v13 = vld [vmem:[#allocation6 + $0x38] sm:$0xff] (!%p1201_p9) }
  0x75   : > { %311 = vst [vmem:[#allocation2] sm:$0xff] %v310_v3  ;;  %v343_v18 = vld [vmem:[%s2038_s1] sm:$0x3] (!%p1201_p9)  ;;  %v331_v19 = vld [vmem:[#allocation6 + $0x20] sm:$0xff] (!%p1201_p9)  ;;  %v333_v20 = vld [vmem:[#allocation6 + $0x30] sm:$0xff] (!%p1201_p9) }
  0x76   : > { %v698_v21 = vld [vmem:[#allocation8 + $0x80] sm:$0xff] (!%p1201_p9)  ;;  %v699_v22 = vld [vmem:[#allocation8 + $0x88] sm:$0xff] (!%p1201_p9)  ;;  %v700_v31 = vld [vmem:[#allocation8 + $0x90] sm:$0xff] (!%p1201_p9) }
  0x77   : > { %v730_v23 = vld [vmem:[#allocation8 + $0x180] sm:$0xff] (!%p1201_p9)  ;;  %v731_v24 = vld [vmem:[#allocation8 + $0x188] sm:$0xff] (!%p1201_p9)  ;;  %v701_v34 = vld [vmem:[#allocation8 + $0x98] sm:$0xff] (!%p1201_p9)  ;;  %v1351_v37 = vpack.c.bf16 (!%p1201_p9), %v699_v22, %v698_v21 }
  0x78   : > { %v682_v25 = vld [vmem:[#allocation8] sm:$0xff] (!%p1201_p9)  ;;  %v683_v26 = vld [vmem:[#allocation8 + $0x8] sm:$0xff] (!%p1201_p9)  ;;  %v732_v35 = vld [vmem:[#allocation8 + $0x190] sm:$0xff] (!%p1201_p9)  ;;  %v1383_v38 = vpack.c.bf16 (!%p1201_p9), %v731_v24, %v730_v23  ;;  %v1355_v43 = vpack.c.bf16 (!%p1201_p9), %v701_v34, %v700_v31 }
  0x79   : > { %v714_v29 = vld [vmem:[#allocation8 + $0x100] sm:$0xff] (!%p1201_p9)  ;;  %v715_v30 = vld [vmem:[#allocation8 + $0x108] sm:$0xff] (!%p1201_p9)  ;;  %v733_v36 = vld [vmem:[#allocation8 + $0x198] sm:$0xff] (!%p1201_p9)  ;;  %v1353_v39 = vpack.c.bf16 (!%p1201_p9), %v683_v26, %v682_v25 }
  0x7a   : > { %v1385_v40 = vpack.c.bf16 (!%p1201_p9), %v715_v30, %v714_v29  ;;  %v684_v41 = vld [vmem:[#allocation8 + $0x10] sm:$0xff] (!%p1201_p9)  ;;  %v685_v42 = vld [vmem:[#allocation8 + $0x18] sm:$0xff] (!%p1201_p9)  ;;  %v1387_v44 = vpack.c.bf16 (!%p1201_p9), %v733_v36, %v732_v35  ;;  %v702_v47 = vld [vmem:[#allocation8 + $0xa0] sm:$0xff] (!%p1201_p9) }
  0x7b   : > { %v716_v45 = vld [vmem:[#allocation8 + $0x110] sm:$0xff]  ;;  %v717_v46 = vld [vmem:[#allocation8 + $0x118] sm:$0xff]  ;;  %v703_v48 = vld [vmem:[#allocation8 + $0xa8] sm:$0xff]  ;;  %v1357_v51 = vpack.c.bf16 %v685_v42, %v684_v41 }
  0x7c   : > { %v316_v4 = vld [vmem:[#allocation2] sm:$0xff]  ;;  %v734_v49 = vld [vmem:[#allocation8 + $0x1a0] sm:$0xff]  ;;  %v1389_v52 = vpack.c.bf16 %v717_v46, %v716_v45  ;;  %v1359_v55 = vpack.c.bf16 %v703_v48, %v702_v47  ;;  %v704_v59 = vld [vmem:[#allocation8 + $0xb0] sm:$0xff] }
  0x7d   : > { %317 = vadd.xlane.f32.xlu0 %v316_v4  ;;  %v735_v50 = vld [vmem:[#allocation8 + $0x1a8] sm:$0xff]  ;;  %v686_v53 = vld [vmem:[#allocation8 + $0x20] sm:$0xff]  ;;  %v705_v60 = vld [vmem:[#allocation8 + $0xb8] sm:$0xff] }
  0x7e   : > { %v687_v54 = vld [vmem:[#allocation8 + $0x28] sm:$0xff]  ;;  %v1391_v56 = vpack.c.bf16 %v735_v50, %v734_v49  ;;  %v718_v57 = vld [vmem:[#allocation8 + $0x120] sm:$0xff]  ;;  %v736_v61 = vld [vmem:[#allocation8 + $0x1b0] sm:$0xff]  ;;  %v1363_v3 = vpack.c.bf16 %v705_v60, %v704_v59 }
  0x7f   : > { %v719_v58 = vld [vmem:[#allocation8 + $0x128] sm:$0xff]  ;;  %v737_v62 = vld [vmem:[#allocation8 + $0x1b8] sm:$0xff]  ;;  %v1361_v63 = vpack.c.bf16 %v687_v54, %v686_v53  ;;  %v688_v1 = vld [vmem:[#allocation8 + $0x30] sm:$0xff] }
  0x80   : > { %v1393_v0 = vpack.c.bf16 %v719_v58, %v718_v57  ;;  %v689_v2 = vld [vmem:[#allocation8 + $0x38] sm:$0xff]  ;;  %v1395_v4 = vpack.c.bf16 %v737_v62, %v736_v61  ;;  %v740_v21 = vld [vmem:[#allocation8 + $0x1d0] sm:$0xff]  ;;  %v710_v31 = vld [vmem:[#allocation8 + $0xe0] sm:$0xff] }
  0x81   : > { %v741_v22 = vld [vmem:[#allocation8 + $0x1d8] sm:$0xff]  ;;  %v692_v25 = vld [vmem:[#allocation8 + $0x50] sm:$0xff]  ;;  %v743_v34 = vld [vmem:[#allocation8 + $0x1e8] sm:$0xff] }
  0x82   : > { %v693_v26 = vld [vmem:[#allocation8 + $0x58] sm:$0xff]  ;;  %v724_v29 = vld [vmem:[#allocation8 + $0x150] sm:$0xff]  ;;  %v726_v41 = vld [vmem:[#allocation8 + $0x160] sm:$0xff] }
  0x83   : > { %v725_v30 = vld [vmem:[#allocation8 + $0x158] sm:$0xff]  ;;  %v1373_v35 = vpack.c.bf16 %v693_v26, %v692_v25  ;;  %v727_v42 = vld [vmem:[#allocation8 + $0x168] sm:$0xff]  ;;  %v712_v45 = vld [vmem:[#allocation8 + $0xf0] sm:$0xff] }
  0x84   : > { %v1405_v36 = vpack.c.bf16 %v725_v30, %v724_v29  ;;  %v713_v46 = vld [vmem:[#allocation8 + $0xf8] sm:$0xff]  ;;  %v744_v47 = vld [vmem:[#allocation8 + $0x1f0] sm:$0xff]  ;;  %v762_v57 = vld [vmem:[#allocation8 + $0x280] sm:$0xff] }
  0x85   : > { %v1379_v48 = vpack.c.bf16 %v713_v46, %v712_v45  ;;  %v745_v49 = vld [vmem:[#allocation8 + $0x1f8] sm:$0xff]  ;;  %v696_v50 = vld [vmem:[#allocation8 + $0x70] sm:$0xff]  ;;  %v763_v58 = vld [vmem:[#allocation8 + $0x288] sm:$0xff] }
  0x86   : > { %v728_v54 = vld [vmem:[#allocation8 + $0x170] sm:$0xff]  ;;  %v794_v59 = vld [vmem:[#allocation8 + $0x380] sm:$0xff]  ;;  %v1415_v60 = vpack.c.bf16 %v763_v58, %v762_v57  ;;  %v795_v61 = vld [vmem:[#allocation8 + $0x388] sm:$0xff] }
  0x87   : > { %v1447_v62 = vpack.c.bf16 %v795_v61, %v794_v59  ;;  %v765_v25 = vld [vmem:[#allocation8 + $0x298] sm:$0xff]  ;;  %v796_v26 = vld [vmem:[#allocation8 + $0x390] sm:$0xff]  ;;  %v783_v61 = vld [vmem:[#allocation8 + $0x328] sm:$0xff] }
 0x10a   : > { %v318_v7 = vpop.xlane.xlu0 %317 }
 0x10b   : > { %v319_v11 = vmul.f32 0.00390625, %v318_v7  ;;  %v706_v7 = vld [vmem:[#allocation8 + $0xc0] sm:$0xff] }
 0x10d   : > { %v336_v14 = vmul.f32 %v328_v6, %v319_v11  ;;  %v338_v15 = vmul.f32 %v330_v8, %v319_v11  ;;  %v335_v16 = vmul.f32 %v327_v9, %v319_v11  ;;  %v337_v17 = vmul.f32 %v329_v10, %v319_v11  ;;  %v721_v6 = vld [vmem:[#allocation8 + $0x138] sm:$0xff]  ;;  %v707_v8 = vld [vmem:[#allocation8 + $0xc8] sm:$0xff]  ;;  %v738_v9 = vld [vmem:[#allocation8 + $0x1c0] sm:$0xff] }
 0x10e   : > { %v340_v27 = vmul.f32 %v332_v12, %v319_v11  ;;  %v342_v28 = vmul.f32 %v334_v13, %v319_v11  ;;  %v339_v32 = vmul.f32 %v331_v19, %v319_v11  ;;  %v341_v33 = vmul.f32 %v333_v20, %v319_v11  ;;  %v739_v10 = vld [vmem:[#allocation8 + $0x1c8] sm:$0xff]  ;;  %v690_v13 = vld [vmem:[#allocation8 + $0x40] sm:$0xff]  ;;  %v708_v19 = vld [vmem:[#allocation8 + $0xd0] sm:$0xff] }
 0x10f   : > { %390 = vmatprep.subr.mxu0 %v336_v14  ;;  %461 = vmatprep.subr.mxu1 %v338_v15  ;;  %v1365_v11 = vpack.c.bf16 %v689_v2, %v688_v1  ;;  %v691_v14 = vld [vmem:[#allocation8 + $0x48] sm:$0xff]  ;;  %v1367_v15 = vpack.c.bf16 %v707_v8, %v706_v7  ;;  %v709_v20 = vld [vmem:[#allocation8 + $0xd8] sm:$0xff] }
 0x110   : > { %391 = vmatpush1.msra.mxu0 %v335_v16  ;;  %462 = vmatpush1.msra.mxu1 %v337_v17  ;;  %v1399_v16 = vpack.c.bf16 %v739_v10, %v738_v9  ;;  %v722_v17 = vld [vmem:[#allocation8 + $0x140] sm:$0xff]  ;;  %v1369_v23 = vpack.c.bf16 %v691_v14, %v690_v13 }
 0x111   : > { %1202 = vmatmul.mubr.msk.f32.vlgmr.msra.gmra.mrb[0].mxu0 %vm386_vm0, %v343_v18  ;;  %1203 = vmatmul.mubr.msk.f32.vlgmr.msra.gmra.mrb[0].mxu1 %vm386_vm0, %v343_v18  ;;  %v746_v14 = vld [vmem:[#allocation8 + $0x200] sm:$0xff] }
 0x112   : > { %532 = vmatprep.subr.mxu0 %v340_v27  ;;  %603 = vmatprep.subr.mxu1 %v342_v28  ;;  %v1371_v27 = vpack.c.bf16 %v709_v20, %v708_v19  ;;  %v1403_v28 = vpack.c.bf16 %v741_v22, %v740_v21  ;;  %v778_v20 = vld [vmem:[#allocation8 + $0x300] sm:$0xff]  ;;  %v779_v21 = vld [vmem:[#allocation8 + $0x308] sm:$0xff]  ;;  %v764_v22 = vld [vmem:[#allocation8 + $0x290] sm:$0xff] }
 0x113   : > { %533 = vmatpush1.msra.mxu0 %v339_v32  ;;  %604 = vmatpush1.msra.mxu1 %v341_v33  ;;  %v711_v32 = vld [vmem:[#allocation8 + $0xe8] sm:$0xff]  ;;  %v742_v33 = vld [vmem:[#allocation8 + $0x1e0] sm:$0xff] }
 0x114   : > { %596 = vmatprep.mubr.f32.mxu0 %v1744_v5  ;;  %667 = vmatprep.mubr.f32.mxu1 %v1744_v5  ;;  %v720_v5 = vld [vmem:[#allocation8 + $0x130] sm:$0xff] }
 0x115   : > { %1204 = vmatmul.mubr.msk.f32.vlgmr.msra.gmra.mrb[2].mxu0 %vm386_vm0, %v343_v18  ;;  %1205 = vmatmul.mubr.msk.f32.vlgmr.msra.gmra.mrb[2].mxu1 %vm386_vm0, %v343_v18  ;;  %v1397_v12 = vpack.c.bf16 %v721_v6, %v720_v5  ;;  %v723_v18 = vld [vmem:[#allocation8 + $0x148] sm:$0xff] }
 0x116   : > { %1352 = vmatprep.subr.bf16.mxu0 %v1351_v37  ;;  %1384 = vmatprep.subr.bf16.mxu1 %v1383_v38  ;;  %v1401_v24 = vpack.c.bf16 %v723_v18, %v722_v17  ;;  %v694_v37 = vld [vmem:[#allocation8 + $0x60] sm:$0xff]  ;;  %v1375_v38 = vpack.c.bf16 %v711_v32, %v710_v31 }
 0x117   : > { %1354 = vmatpush3.bf16.msra.mxu0 %v1353_v39  ;;  %1386 = vmatpush3.bf16.msra.mxu1 %v1385_v40  ;;  %v1407_v39 = vpack.c.bf16 %v743_v34, %v742_v33  ;;  %v695_v40 = vld [vmem:[#allocation8 + $0x68] sm:$0xff]  ;;  %v1449_v34 = vpack.c.bf16 %v779_v21, %v778_v20 }
 0x118   : > { %1356 = vmatprep.subr.bf16.mxu0 %v1355_v43  ;;  %1388 = vmatprep.subr.bf16.mxu1 %v1387_v44  ;;  %v1377_v43 = vpack.c.bf16 %v695_v40, %v694_v37  ;;  %v1409_v44 = vpack.c.bf16 %v727_v42, %v726_v41  ;;  %v1419_v40 = vpack.c.bf16 %v765_v25, %v764_v22  ;;  %v780_v42 = vld [vmem:[#allocation8 + $0x310] sm:$0xff]  ;;  %v786_v22 = vld [vmem:[#allocation8 + $0x340] sm:$0xff]  ;;  %v773_v25 = vld [vmem:[#allocation8 + $0x2d8] sm:$0xff] }
 0x11b   : > { %1358 = vmatpush3.bf16.msra.mxu0 %v1357_v51  ;;  %1390 = vmatpush3.bf16.msra.mxu1 %v1389_v52  ;;  %v697_v51 = vld [vmem:[#allocation8 + $0x78] sm:$0xff]  ;;  %v1411_v52 = vpack.c.bf16 %v745_v49, %v744_v47  ;;  %v767_v47 = vld [vmem:[#allocation8 + $0x2a8] sm:$0xff] }
 0x11c   : > { %1360 = vmatprep.subr.bf16.mxu0 %v1359_v55  ;;  %1392 = vmatprep.subr.bf16.mxu1 %v1391_v56  ;;  %v1381_v53 = vpack.c.bf16 %v697_v51, %v696_v50  ;;  %v729_v55 = vld [vmem:[#allocation8 + $0x178] sm:$0xff]  ;;  %v799_v49 = vld [vmem:[#allocation8 + $0x3a8] sm:$0xff] }
 0x11d   : > { %v1413_v56 = vpack.c.bf16 %v729_v55, %v728_v54  ;;  %v750_v54 = vld [vmem:[#allocation8 + $0x220] sm:$0xff]  ;;  %v751_v55 = vld [vmem:[#allocation8 + $0x228] sm:$0xff] }
 0x11f   : > { %1362 = vmatpush3.bf16.msra.mxu0 %v1361_v63  ;;  %1394 = vmatpush3.bf16.msra.mxu1 %v1393_v0  ;;  %v346_v63 = vlaneseq }
 0x120   : > { %1364 = vmatprep.subr.bf16.mxu0 %v1363_v3  ;;  %1396 = vmatprep.subr.bf16.mxu1 %v1395_v4  ;;  %v1966_v3 = vld [vmem:[%s2040_s3] sm:$0xff] }
 0x121   : > { %v1959_v0 = vshrl.u32 %v346_v63, 7  ;;  %v769_v63 = vld [vmem:[#allocation8 + $0x2b8] sm:$0xff] }
 0x123   : > { %1366 = vmatpush3.bf16.msra.mxu0 %v1365_v11  ;;  %1398 = vmatpush3.bf16.msra.mxu1 %v1397_v12  ;;  %v348_v1 = vsub.s32 0, %v1959_v0  ;;  %v356_v2 = vsub.s32 2, %v1959_v0  ;;  %v352_v4 = vsub.s32 1, %v1959_v0  ;;  %v360_v5 = vsub.s32 3, %v1959_v0 }
 0x124   : > { %1368 = vmatprep.subr.bf16.mxu0 %v1367_v15  ;;  %1400 = vmatprep.subr.bf16.mxu1 %v1399_v16  ;;  %v368_v10 = vsub.s32 5, %v1959_v0  ;;  %v376_v11 = vsub.s32 7, %v1959_v0  ;;  %v747_v15 = vld [vmem:[#allocation8 + $0x208] sm:$0xff] }
 0x125   : > { %v349_v6 = vrot.slane %v1966_v3, %v348_v1  ;;  %v357_v7 = vrot.slane %v1966_v3, %v356_v2  ;;  %v353_v8 = vrot.slane %v1966_v3, %v352_v4  ;;  %v361_v9 = vrot.slane %v1966_v3, %v360_v5  ;;  %v800_v1 = vld [vmem:[#allocation8 + $0x3b0] sm:$0xff]  ;;  %v801_v2 = vld [vmem:[#allocation8 + $0x3b8] sm:$0xff] }
 0x126   : > { %v377_v29 = vrot.slane %v1966_v3, %v376_v11  ;;  %v1417_v33 = vpack.c.bf16 %v747_v15, %v746_v14  ;;  %v1425_v4 = vpack.c.bf16 %v751_v55, %v750_v54  ;;  %v785_v11 = vld [vmem:[#allocation8 + $0x338] sm:$0xff]  ;;  %v802_v14 = vld [vmem:[#allocation8 + $0x3c0] sm:$0xff]  ;;  %v803_v15 = vld [vmem:[#allocation8 + $0x3c8] sm:$0xff] }
 0x127   : > { %1370 = vmatpush3.bf16.msra.mxu0 %v1369_v23  ;;  %1402 = vmatpush3.bf16.msra.mxu1 %v1401_v24  ;;  %v1463_v21 = vpack.c.bf16 %v803_v15, %v802_v14  ;;  %v808_v54 = vld [vmem:[#allocation8 + $0x3f0] sm:$0xff]  ;;  %v809_v55 = vld [vmem:[#allocation8 + $0x3f8] sm:$0xff] }
 0x128   : > { %1372 = vmatprep.subr.bf16.mxu0 %v1371_v27  ;;  %1404 = vmatprep.subr.bf16.mxu1 %v1403_v28  ;;  %v797_v27 = vld [vmem:[#allocation8 + $0x398] sm:$0xff]  ;;  %v369_v28 = vrot.slane %v1966_v3, %v368_v10  ;;  %v784_v10 = vld [vmem:[#allocation8 + $0x330] sm:$0xff] }
 0x129   : > { %v1451_v41 = vpack.c.bf16 %v797_v27, %v796_v26  ;;  %v804_v26 = vld [vmem:[#allocation8 + $0x3d0] sm:$0xff]  ;;  %v805_v27 = vld [vmem:[#allocation8 + $0x3d8] sm:$0xff] }
 0x12b   : > { %1374 = vmatpush3.bf16.msra.mxu0 %v1373_v35  ;;  %1406 = vmatpush3.bf16.msra.mxu1 %v1405_v36  ;;  %v748_v35 = vld [vmem:[#allocation8 + $0x210] sm:$0xff]  ;;  %v749_v36 = vld [vmem:[#allocation8 + $0x218] sm:$0xff] }
 0x12c   : > { %1376 = vmatprep.subr.bf16.mxu0 %v1375_v38  ;;  %1408 = vmatprep.subr.bf16.mxu1 %v1407_v39 }
 0x12f   : > { %1378 = vmatpush3.bf16.msra.mxu0 %v1377_v43  ;;  %1410 = vmatpush3.bf16.msra.mxu1 %v1409_v44  ;;  %v781_v43 = vld [vmem:[#allocation8 + $0x318] sm:$0xff]  ;;  %v766_v44 = vld [vmem:[#allocation8 + $0x2a0] sm:$0xff] }
 0x130   : > { %1380 = vmatprep.subr.bf16.mxu0 %v1379_v48  ;;  %1412 = vmatprep.subr.bf16.mxu1 %v1411_v52  ;;  %v798_v48 = vld [vmem:[#allocation8 + $0x3a0] sm:$0xff]  ;;  %v1421_v52 = vpack.c.bf16 %v749_v36, %v748_v35  ;;  %v1423_v58 = vpack.c.bf16 %v767_v47, %v766_v44  ;;  %v789_v35 = vld [vmem:[#allocation8 + $0x358] sm:$0xff]  ;;  %v364_v47 = vsub.s32 4, %v1959_v0 }
 0x131   : > { %v1455_v59 = vpack.c.bf16 %v799_v49, %v798_v48  ;;  %v774_v36 = vld [vmem:[#allocation8 + $0x2e0] sm:$0xff] }
 0x133   : > { %1382 = vmatpush3.bf16.msra.mxu0 %v1381_v53  ;;  %1414 = vmatpush3.bf16.msra.mxu1 %v1413_v56  ;;  %v1453_v53 = vpack.c.bf16 %v781_v43, %v780_v42  ;;  %v372_v42 = vsub.s32 6, %v1959_v0 }
 0x134   : > { %1416 = vmatprep.subr.bf16.mxu0 %v1415_v60  ;;  %1448 = vmatprep.subr.bf16.mxu1 %v1447_v62  ;;  %v782_v60 = vld [vmem:[#allocation8 + $0x320] sm:$0xff]  ;;  %v768_v62 = vld [vmem:[#allocation8 + $0x2b0] sm:$0xff] }
 0x135   : > { %v1457_v5 = vpack.c.bf16 %v783_v61, %v782_v60  ;;  %v365_v60 = vrot.slane %v1966_v3, %v364_v47  ;;  %v1475_v61 = vpack.c.bf16 %v809_v55, %v808_v54 }
 0x1e4   : > { %v456_v12 = vpop.f32.mrb[0].mxu0  ;;  %v527_v13 = vpop.f32.mrb[0].mxu1 }
 0x1e5   : > { %v457_v16 = vadd.f32 %v456_v12, %v349_v6  ;;  %v528_v17 = vadd.f32 %v527_v13, %v357_v7  ;;  %v458_v18 = vpop.f32.mrb[1].mxu0  ;;  %v529_v19 = vpop.f32.mrb[1].mxu1  ;;  %v752_v6 = vld [vmem:[#allocation8 + $0x230] sm:$0xff]  ;;  %v753_v7 = vld [vmem:[#allocation8 + $0x238] sm:$0xff]  ;;  %v770_v12 = vld [vmem:[#allocation8 + $0x2c0] sm:$0xff] }
 0x1e6   : > { %v459_v23 = vadd.f32 %v458_v18, %v353_v8  ;;  %v530_v24 = vadd.f32 %v529_v19, %v361_v9  ;;  %v1427_v8 = vpack.c.bf16 %v769_v63, %v768_v62  ;;  %v1459_v9 = vpack.c.bf16 %v801_v2, %v800_v1  ;;  %v771_v13 = vld [vmem:[#allocation8 + $0x2c8] sm:$0xff]  ;;  %v754_v18 = vld [vmem:[#allocation8 + $0x240] sm:$0xff]  ;;  %v761_v62 = vld [vmem:[#allocation8 + $0x278] sm:$0xff] }
 0x1e7   : > { %v676_v30 = vmax.f32 %v528_v17, 0.0  ;;  %v674_v39 = vmax.f32 %v457_v16, 0.0  ;;  %v1429_v16 = vpack.c.bf16 %v753_v7, %v752_v6  ;;  %v1461_v17 = vpack.c.bf16 %v785_v11, %v784_v10  ;;  %v755_v19 = vld [vmem:[#allocation8 + $0x248] sm:$0xff]  ;;  %v792_v63 = vld [vmem:[#allocation8 + $0x370] sm:$0xff]  ;;  %v793_v1 = vld [vmem:[#allocation8 + $0x378] sm:$0xff] }
 0x1e8   : > { %v675_v31 = vmax.f32 %v459_v23, 0.0  ;;  %v677_v32 = vmax.f32 %v530_v24, 0.0  ;;  %v1978_v37 = vpop.f32.mrb[2].mxu0  ;;  %v1980_v38 = vpop.f32.mrb[2].mxu1  ;;  %v1431_v20 = vpack.c.bf16 %v771_v13, %v770_v12  ;;  %v787_v23 = vld [vmem:[#allocation8 + $0x348] sm:$0xff]  ;;  %v772_v24 = vld [vmem:[#allocation8 + $0x2d0] sm:$0xff] }
 0x1e9   : > { %v600_v45 = vpop.f32.mrb[3].mxu0  ;;  %v671_v46 = vpop.f32.mrb[3].mxu1  ;;  %v599_v6 = vadd.f32 %v1978_v37, %v365_v60 }
 0x1ea   : > { %881 = vmatprep.mubr.f32.mxu0 %v675_v31  ;;  %951 = vmatprep.mubr.f32.mxu1 %v677_v32  ;;  %v601_v50 = vadd.f32 %v600_v45, %v369_v28  ;;  %v672_v51 = vadd.f32 %v671_v46, %v377_v29  ;;  %v1433_v28 = vpack.c.bf16 %v755_v19, %v754_v18  ;;  %v757_v31 = vld [vmem:[#allocation8 + $0x258] sm:$0xff]  ;;  %v758_v45 = vld [vmem:[#allocation8 + $0x260] sm:$0xff]  ;;  %v759_v46 = vld [vmem:[#allocation8 + $0x268] sm:$0xff] }
 0x1eb   : > { %882 = vmatmul.mubr.f32.vlgmr.msra.gmra.mrb[4].mxu0 %v674_v39  ;;  %952 = vmatmul.mubr.f32.vlgmr.msra.gmra.mrb[4].mxu1 %v676_v30  ;;  %v1465_v29 = vpack.c.bf16 %v787_v23, %v786_v22  ;;  %v756_v30 = vld [vmem:[#allocation8 + $0x250] sm:$0xff]  ;;  %v1435_v32 = vpack.c.bf16 %v773_v25, %v772_v24  ;;  %v775_v39 = vld [vmem:[#allocation8 + $0x2e8] sm:$0xff] }
 0x1ec   : > { %1418 = vmatpush3.bf16.msra.mxu0 %v1417_v33  ;;  %1450 = vmatpush3.bf16.msra.mxu1 %v1449_v34  ;;  %v679_v56 = vmax.f32 %v601_v50, 0.0  ;;  %v681_v57 = vmax.f32 %v672_v51, 0.0  ;;  %v1467_v33 = vpack.c.bf16 %v805_v27, %v804_v26  ;;  %v788_v34 = vld [vmem:[#allocation8 + $0x350] sm:$0xff]  ;;  %v1437_v43 = vpack.c.bf16 %v757_v31, %v756_v30  ;;  %v790_v50 = vld [vmem:[#allocation8 + $0x360] sm:$0xff]  ;;  %v791_v51 = vld [vmem:[#allocation8 + $0x368] sm:$0xff] }
 0x1ed   : > { %1420 = vmatprep.subr.bf16.mxu0 %v1419_v40  ;;  %1452 = vmatprep.subr.bf16.mxu1 %v1451_v41  ;;  %v806_v40 = vld [vmem:[#allocation8 + $0x3e0] sm:$0xff]  ;;  %v807_v41 = vld [vmem:[#allocation8 + $0x3e8] sm:$0xff]  ;;  %v1469_v44 = vpack.c.bf16 %v789_v35, %v788_v34  ;;  %v1439_v48 = vpack.c.bf16 %v775_v39, %v774_v36 }
 0x1ee   : > { %1021 = vmatprep.mubr.f32.mxu0 %v679_v56  ;;  %1091 = vmatprep.mubr.f32.mxu1 %v681_v57  ;;  %v1471_v49 = vpack.c.bf16 %v807_v41, %v806_v40  ;;  %v373_v56 = vrot.slane %v1966_v3, %v372_v42  ;;  %v1441_v57 = vpack.c.bf16 %v759_v46, %v758_v45  ;;  %v678_v3 = vmax.f32 %v599_v6, 0.0 }
 0x1f0   : > { %1422 = vmatpush3.bf16.msra.mxu0 %v1421_v52  ;;  %1454 = vmatpush3.bf16.msra.mxu1 %v1453_v53  ;;  %v776_v52 = vld [vmem:[#allocation8 + $0x2f0] sm:$0xff]  ;;  %v777_v53 = vld [vmem:[#allocation8 + $0x2f8] sm:$0xff]  ;;  %v670_v2 = vadd.f32 %v1980_v38, %v373_v56  ;;  %v1206_v38 = vld [vmem:[%s2042_s5] ss:$0 sm:$0xff] }
 0x1f1   : > { %1424 = vmatprep.subr.bf16.mxu0 %v1423_v58  ;;  %1456 = vmatprep.subr.bf16.mxu1 %v1455_v59  ;;  %v1473_v58 = vpack.c.bf16 %v791_v51, %v790_v50  ;;  %v760_v59 = vld [vmem:[#allocation8 + $0x270] sm:$0xff]  ;;  %v1443_v0 = vpack.c.bf16 %v777_v53, %v776_v52 }
 0x1f2   : > { %v680_v7 = vmax.f32 %v670_v2, 0.0 }
 0x1f4   : > { %1426 = vmatpush3.bf16.msra.mxu0 %v1425_v4  ;;  %1458 = vmatpush3.bf16.msra.mxu1 %v1457_v5  ;;  %v1445_v4 = vpack.c.bf16 %v761_v62, %v760_v59  ;;  %v1477_v5 = vpack.c.bf16 %v793_v1, %v792_v63 }
 0x1f5   : > { %1428 = vmatprep.subr.bf16.mxu0 %v1427_v8  ;;  %1460 = vmatprep.subr.bf16.mxu1 %v1459_v9 }
 0x1f8   : > { %1430 = vmatpush3.bf16.msra.mxu0 %v1429_v16  ;;  %1462 = vmatpush3.bf16.msra.mxu1 %v1461_v17 }
 0x1f9   : > { %1432 = vmatprep.subr.bf16.mxu0 %v1431_v20  ;;  %1464 = vmatprep.subr.bf16.mxu1 %v1463_v21 }
 0x1fc   : > { %1434 = vmatpush3.bf16.msra.mxu0 %v1433_v28  ;;  %1466 = vmatpush3.bf16.msra.mxu1 %v1465_v29 }
 0x1fd   : > { %1436 = vmatprep.subr.bf16.mxu0 %v1435_v32  ;;  %1468 = vmatprep.subr.bf16.mxu1 %v1467_v33 }
 0x200   : > { %1438 = vmatpush3.bf16.msra.mxu0 %v1437_v43  ;;  %1470 = vmatpush3.bf16.msra.mxu1 %v1469_v44 }
 0x201   : > { %1440 = vmatprep.subr.bf16.mxu0 %v1439_v48  ;;  %1472 = vmatprep.subr.bf16.mxu1 %v1471_v49 }
 0x204   : > { %1442 = vmatpush3.bf16.msra.mxu0 %v1441_v57  ;;  %1474 = vmatpush3.bf16.msra.mxu1 %v1473_v58 }
 0x205   : > { %1444 = vmatprep.subr.bf16.mxu0 %v1443_v0  ;;  %1476 = vmatprep.subr.bf16.mxu1 %v1475_v61 }
 0x208   : > { %1446 = vmatpush3.bf16.msra.mxu0 %v1445_v4  ;;  %1478 = vmatpush3.bf16.msra.mxu1 %v1477_v5 }
 0x20b   : > { %1022 = vmatmul.mubr.f32.vlgmr.msra.gmra.mrb[6].mxu0 %v678_v3  ;;  %1092 = vmatmul.mubr.f32.vlgmr.msra.gmra.mrb[6].mxu1 %v680_v7 }
 0x2be   : > { %v1243_v8 = vpop.f32.mrb[4].mxu0  ;;  %v1278_v9 = vpop.f32.mrb[4].mxu1 }
 0x2bf   : > { %v1244_v10 = vpop.f32.mrb[5].mxu0  ;;  %v1279_v11 = vpop.f32.mrb[5].mxu1 }
 0x2c0   : > { %v1245_v12 = vadd.f32 %v1244_v10, %v1243_v8  ;;  %v1280_v13 = vadd.f32 %v1279_v11, %v1278_v9 }
 0x2c2   : > { %v884_v14 = vadd.f32 %v1245_v12, %v1206_v38 }
 0x2c4   : > { %v954_v37 = vadd.f32 %v1280_v13, %v884_v14 }
 0x2de   : > { %v1313_v15 = vpop.f32.mrb[6].mxu0  ;;  %v1348_v16 = vpop.f32.mrb[6].mxu1 }
 0x2df   : > { %v1314_v17 = vpop.f32.mrb[7].mxu0  ;;  %v1349_v18 = vpop.f32.mrb[7].mxu1 }
 0x2e0   : > { %v1315_v19 = vadd.f32 %v1314_v17, %v1313_v15  ;;  %v1350_v20 = vadd.f32 %v1349_v18, %v1348_v16 }
 0x2e2   : > { %v1024_v21 = vadd.f32 %v1315_v19, %v954_v37 }
 0x2e4   : > { %v1094_v22 = vadd.f32 %v1350_v20, %v1024_v21 }
 0x2e6   : > { %1097 = vst [vmem:[#allocation9] sm:$0x3] %v1094_v22 }
 0x2e7 PF: > { %p1993_p8 = scmp.eq.s32.totalorder %s1189_s27, 1  ;;  %s1745_s19 = smov [#allocation9]  }
 0x2e8   : > { %s1107_s15 = sshll.u32 %s1745_s19, 4  ;;  %s1108_s15 = int_to_ptr.vmem [resolvable:$true] %s1107_s15 }
 0x2e9   : > { %s1652_s9 = scalar_lea.vmem %s1108_s15, 32  ;;  %p1659_p10 = scmp.lt.s32.totalorder %s1108_s15, %s1108_s15 }
 0x2ea   : > { %p1653_p1 = scmp.ne.s32.totalorder %s1108_s15, %s1652_s9  ;;  %p1660_p11 = scmp.lt.s32.totalorder %s1652_s9, %s1652_s9 }
 0x2ec   : > { %p1654_p4 = pnand %p1653_p1, %p1993_p8  ;;  %p1661_p13 = por %p1660_p11, %p1659_p10 }
 0x2ee   : > { %p1655_p5 = pneg %p1654_p4 }
 0x2f0   : > { %p1662_p2 = pnand %p1661_p13, %p1655_p5 }
 0x2f2   : > { %1665 = shalt.err (!%p1662_p2)
}
 0x2f3   : > { %s1666_s27 = scalar_lea.hbm %s2043_s6, 32 }
 0x2f4   : > { %p1667_p3 = scmp.ne.s32.totalorder %s2043_s6, %s1666_s27  ;;  %p1672_p6 = scmp.lt.u32.totalorder %s1666_s27, %s2043_s6 }
 0x2f6   : > { %p1668_p0 = pnand %p1667_p3, %p1993_p8 }
 0x2f8   : > { %p1669_p12 = pneg %p1668_p0 }
 0x2fa   : > { %p1674_p7 = pnand %p1672_p6, %p1669_p12 }
 0x2fc   : > { %1677 = shalt.err (!%p1674_p7)
}
 0x2fd   : > { %1490 = dma.vmem_to_hbm [thread:$0]  (%p1993_p8), %s1108_s15, 32, %s2043_s6, [#allocation5]  }
 0x2fe   : > { %1711 = dma.done.wait (%p1993_p8), [#allocation5], 32  }
 0x2ff   : > { %1713 = vsyncadd (%p1993_p8), [#allocation5], 4294967264 }
 0x300 PF: > { %s21_s26 = sadd.s32 1, %s1736_s26   ;;  %s2057_s29 = smov %s2064_s21 }
 0x301   : > { %p18_p9 = scmp.ge.s32.totalorder %s21_s26, 4   ;;  %s2058_s21 = smov %s1720_s22 }
 0x302   : > { %s2059_s22 = smov %s1724_s23  ;;  %s2060_s23 = smov %s1899_s14 }
 0x303   : > { %s2061_s24 = smov %s1732_s25  ;;  %s2062_s25 = smov %s2057_s29 }
 0x304   :  { %20 = sbr.rel (!%p18_p9) target bundleno = 6 (0x6), region = 98 }
 0x30b   :  { %1120 = vsyncpa [#allocation4], 1 }
 0x30c   :  { %1122 = vsyncpa [#allocation4 + $0x1], 1 }
 0x30d   :  { %1123 = vsyncpa [#allocation7], 1 }
 0x30e   :  { %1124 = vsyncpa [#allocation5], 1 }
 0x30f   :  { %1126 = vsyncpa [#allocation5 + $0x1], 1 }

</bundles_post_ra>
